<compile_context>
chip_gen: v6e
topology: v6e:2x2x1
jax: 0.10.0
libtpu: 0.0.40
codegen_flags: <defaults>
</compile_context>

<pallas_src>
import functools

import jax
import jax.numpy as jnp
from jax import lax
from jax.experimental import pallas as pl
from jax.experimental.pallas import tpu as pltpu


def _divisor_tile(dim: int, preferred: int) -> int:
    """Largest multiple-of-128 divisor of `dim` that is <= `preferred`,
    falling back to the full dim.  Used for reduction / in-kernel-sliced axes
    where the tile must divide the dim exactly (no padded boundary blocks)."""
    if dim <= preferred:
        return dim
    t = (preferred // 128) * 128
    while t >= 128:
        if dim % t == 0:
            return t
        t -= 128
    return dim


# ----------------------------------------------------------------------------
# Kernel 1: per-input-column inverse scale.
#   grid = (j over in_f column blocks [parallel], k over out_f chunks [arbitrary])
#   Per (j, k): Gram_blk += W[k_chunk, :]^T @ W[k_chunk, j_blk]  (MXU, f32 acc)
#   At k == last: inv_scale[0, j_blk] = rsqrt( sum_i |Gram_blk[i, :]| + 1e-6 )
# ----------------------------------------------------------------------------
def _inv_scale_kernel(w_ref, o_ref, gram_acc, *, tile_j: int):
    k = pl.program_id(1)

    @pl.when(k == 0)
    def _():
        gram_acc[...] = jnp.zeros_like(gram_acc)

    w_blk = w_ref[...]                                        # (tile_ko, in_f)
    col0 = pl.multiple_of(pl.program_id(0) * tile_j, tile_j)  # lane-aligned
    w_cols = w_ref[:, pl.ds(col0, tile_j)]                    # (tile_ko, tile_j)
    # Contract dim 0 of both operands (the MXU's transposed-LHS form); no
    # transpose of W is materialized in the wrapper.
    gram_acc[...] += lax.dot_general(
        w_blk, w_cols,
        dimension_numbers=(((0,), (0,)), ((), ())),
        preferred_element_type=jnp.float32)                   # (in_f, tile_j)

    @pl.when(k == pl.num_programs(1) - 1)
    def _():
        bounds_sq = jnp.sum(jnp.abs(gram_acc[...]), axis=0, keepdims=True)
        o_ref[...] = lax.rsqrt(bounds_sq + 1e-6)


def aol_inv_scale(weight: jax.Array, *, tile_j: int = 256, tile_ko: int = 256,
                  vmem_limit_bytes: int = 64 * 1024 * 1024) -> jax.Array:
    out_f, in_f = weight.shape
    tile_j = _divisor_tile(in_f, tile_j)     # must divide in_f (in-kernel slice)
    tile_ko = _divisor_tile(out_f, tile_ko)  # reduction chunk: must divide out_f
    grid = (in_f // tile_j, out_f // tile_ko)
    itemsize = jnp.dtype(weight.dtype).itemsize
    cost = pl.CostEstimate(
        flops=2 * out_f * in_f * in_f,
        transcendentals=in_f,
        bytes_accessed=(in_f // tile_j) * out_f * in_f * itemsize + in_f * 4)
    return pl.pallas_call(
        functools.partial(_inv_scale_kernel, tile_j=tile_j),
        out_shape=jax.ShapeDtypeStruct((1, in_f), jnp.float32),
        grid_spec=pltpu.PrefetchScalarGridSpec(
            num_scalar_prefetch=0,
            grid=grid,
            in_specs=[
                # W streamed as (tile_ko, in_f) chunks over the out_f axis.
                pl.BlockSpec((tile_ko, in_f), lambda j, k: (k, 0)),
            ],
            out_specs=pl.BlockSpec((1, tile_j), lambda j, k: (0, j)),
            scratch_shapes=[pltpu.VMEM((in_f, tile_j), jnp.float32)]),
        compiler_params=pltpu.CompilerParams(
            dimension_semantics=("parallel", "arbitrary"),
            vmem_limit_bytes=vmem_limit_bytes),
        cost_estimate=cost,
    )(weight)


# ----------------------------------------------------------------------------
# Kernel 2: fused scaled linear  y = (x * inv_scale) @ W^T + b
#   grid = (i over batch [parallel], j over out_f [parallel],
#           k over in_f   [arbitrary, last])
#   Identical math to x @ (W * diag(inv_scale))^T; the scale is applied to the
#   activation tile per K-chunk (cheap VPU multiply), so the rescaled weight
#   never round-trips through HBM.
# ----------------------------------------------------------------------------
def _fused_linear_kernel(inv_scale_ref, x_ref, w_ref, b_ref, o_ref, acc_ref):
    k = pl.program_id(2)

    @pl.when(k == 0)
    def _():
        acc_ref[...] = jnp.zeros_like(acc_ref)

    # Scale kept in the input dtype so bf16 activations stay bf16 on the MXU.
    xs = x_ref[...] * inv_scale_ref[...].astype(x_ref.dtype)
    acc_ref[...] += lax.dot_general(
        xs, w_ref[...],
        dimension_numbers=(((1,), (1,)), ((), ())),   # contract in_features
        preferred_element_type=jnp.float32)           # (tile_b, tile_n)

    @pl.when(k == pl.num_programs(2) - 1)
    def _():
        o_ref[...] = (acc_ref[...] +
                      b_ref[...].astype(jnp.float32)).astype(o_ref.dtype)


def aol_linear_apply(x: jax.Array, weight: jax.Array, bias: jax.Array,
                     inv_scale: jax.Array, *, tile_b: int = 256,
                     tile_n: int = 256, tile_k: int = 512,
                     vmem_limit_bytes: int = 64 * 1024 * 1024) -> jax.Array:
    B, in_f = x.shape
    out_f, _ = weight.shape
    tile_b = min(B, tile_b)                  # parallel axis: padding is safe
    tile_n = min(out_f, tile_n)              # parallel axis: padding is safe
    tile_k = _divisor_tile(in_f, tile_k)     # reduction axis: must divide in_f
    bias2d = bias.reshape(1, out_f)
    grid = (pl.cdiv(B, tile_b), pl.cdiv(out_f, tile_n), in_f // tile_k)
    itemsize = jnp.dtype(x.dtype).itemsize
    cost = pl.CostEstimate(
        flops=2 * B * out_f * in_f + B * in_f + B * out_f,
        transcendentals=0,
        bytes_accessed=(B * in_f + pl.cdiv(B, tile_b) * out_f * in_f
                        + B * out_f) * itemsize)
    return pl.pallas_call(
        _fused_linear_kernel,
        out_shape=jax.ShapeDtypeStruct((B, out_f), x.dtype),
        grid_spec=pltpu.PrefetchScalarGridSpec(
            num_scalar_prefetch=0,
            grid=grid,
            in_specs=[
                pl.BlockSpec((1, tile_k), lambda i, j, k: (0, k)),       # inv_scale
                pl.BlockSpec((tile_b, tile_k), lambda i, j, k: (i, k)),  # x
                pl.BlockSpec((tile_n, tile_k), lambda i, j, k: (j, k)),  # W
                pl.BlockSpec((1, tile_n), lambda i, j, k: (0, j)),       # bias
            ],
            out_specs=pl.BlockSpec((tile_b, tile_n), lambda i, j, k: (i, j)),
            scratch_shapes=[pltpu.VMEM((tile_b, tile_n), jnp.float32)]),
        compiler_params=pltpu.CompilerParams(
            dimension_semantics=("parallel", "parallel", "arbitrary"),
            vmem_limit_bytes=vmem_limit_bytes),
        cost_estimate=cost,
    )(inv_scale, x, weight, bias2d)


def aol_linear_forward(x, weight, bias):
    # For inference (static weights) hoist / cache aol_inv_scale outside the
    # step function — it costs O(out_f * in_f^2) FLOPs and dominates when
    # batch < in_f (mirrors the module's @train_val_cached get_weight()).
    inv_scale = aol_inv_scale(weight)
    return aol_linear_apply(x, weight, bias, inv_scale)


# ----------------------------------------------------------------------------
# Pure-JAX reference for the correctness check.
# ----------------------------------------------------------------------------
def _reference(x, weight, bias):
    wwt = jnp.matmul(weight.T, weight, precision=lax.Precision.HIGHEST)
    bounds_sq = jnp.sum(jnp.abs(wwt), axis=0, keepdims=True)
    w_r = weight / jnp.sqrt(bounds_sq + 1e-6)
    return jnp.matmul(x, w_r.T, precision=lax.Precision.HIGHEST) + bias


if __name__ == "__main__":
    key = jax.random.PRNGKey(0)
    k_x, k_w, k_b = jax.random.split(key, 3)

    # Small, MXU-aligned shapes; 128-wide tiles below force multi-step grids
    # (2x3 parallel blocks, 2- and 3-step K reductions) so both accumulator
    # paths are exercised end-to-end.
    batch, in_features, out_features = 256, 256, 384

    # Deterministic init mimicking nn.init.eye_ plus a small perturbation so
    # the AOL rescale is non-trivial.
    weight = (jnp.eye(out_features, in_features, dtype=jnp.float32)
              + 0.05 * jax.random.normal(k_w, (out_features, in_features),
                                         dtype=jnp.float32))
    bias = 0.1 * jax.random.normal(k_b, (out_features,), dtype=jnp.float32)
    x = jax.random.normal(k_x, (batch, in_features), dtype=jnp.float32)

    inv_scale = aol_inv_scale(weight, tile_j=128, tile_ko=128)
    y = aol_linear_apply(x, weight, bias, inv_scale,
                         tile_b=128, tile_n=128, tile_k=128)
    y = jax.block_until_ready(y)

    y_ref = _reference(x, weight, bias)
    assert y.shape == y_ref.shape
    assert jnp.allclose(y, y_ref, atol=1e-3, rtol=1e-3), "mismatch vs reference"

    print("KERNEL_OK")
</pallas_src>

<mosaic_0001>
module attributes {stable_mosaic.version = 11 : i64} {
  func.func @_inv_scale_kernel(%arg0: i32, %arg1: i32, %arg2: memref<128x256xf32, #tpu.memory_space<vmem>>, %arg3: memref<1x128xf32, #tpu.memory_space<vmem>>, %arg4: memref<256x128xf32, #tpu.memory_space<vmem>>) attributes {dimension_semantics = [#tpu.dimension_semantics<parallel>, #tpu.dimension_semantics<arbitrary>], iteration_bounds = array<i64: 2, 3>, scalar_prefetch = 0 : i64, scratch_operands = 1 : i64, tpu.core_type = #tpu.core_type<tc>, window_params = [{transform_indices = @transform_0, window_bounds = array<i64: 128, 256>}, {transform_indices = @transform_1, window_bounds = array<i64: 1, 128>}]} {
    %c0_i32 = arith.constant 0 : i32
    %0 = arith.cmpi eq, %arg1, %c0_i32 : i32
    %1 = arith.extui %0 : i1 to i32
    %c0_i32_0 = arith.constant 0 : i32
    %2 = arith.cmpi ne, %1, %c0_i32_0 : i32
    scf.if %2 {
      %cst_8 = arith.constant 0.000000e+00 : f32
      %15 = vector.broadcast %cst_8 : f32 to vector<256x128xf32>
      %c0_9 = arith.constant 0 : index
      %c0_10 = arith.constant 0 : index
      %16 = vector.load %arg4[%c0_9, %c0_10] : memref<256x128xf32, #tpu.memory_space<vmem>>, vector<256x128xf32>
      tpu.vector_store %arg4[%c0_9, %c0_10], %15 {strides = array<i32>} : memref<256x128xf32, #tpu.memory_space<vmem>>, vector<256x128xf32>,
    } else {
    }
    %c0 = arith.constant 0 : index
    %c0_1 = arith.constant 0 : index
    %3 = vector.load %arg2[%c0, %c0_1] : memref<128x256xf32, #tpu.memory_space<vmem>>, vector<128x256xf32>
    %c128_i32 = arith.constant 128 : i32
    %4 = arith.muli %arg0, %c128_i32 : i32
    %5 = tpu.assume_multiple %4, 128 : i32
    %c0_2 = arith.constant 0 : index
    %6 = arith.index_cast %5 : i32 to index
    %7 = vector.load %arg2[%c0_2, %6] : memref<128x256xf32, #tpu.memory_space<vmem>>, vector<128x128xf32>
    %c0_3 = arith.constant 0 : index
    %c0_4 = arith.constant 0 : index
    %8 = vector.load %arg4[%c0_3, %c0_4] : memref<256x128xf32, #tpu.memory_space<vmem>>, vector<256x128xf32>
    %cst = arith.constant dense<0.000000e+00> : vector<256x128xf32>
    %9 = tpu.matmul %3, %7, %cst {dimension_numbers = #tpu.dot_dimension_numbers<[0], [0], [1], [1], [0, 1, 1, 1], [], []>} : vector<128x256xf32>, vector<128x128xf32>, vector<256x128xf32> -> vector<256x128xf32>
    %10 = arith.addf %8, %9 : vector<256x128xf32>
    %c0_5 = arith.constant 0 : index
    %c0_6 = arith.constant 0 : index
    %11 = vector.load %arg4[%c0_5, %c0_6] : memref<256x128xf32, #tpu.memory_space<vmem>>, vector<256x128xf32>
    tpu.vector_store %arg4[%c0_5, %c0_6], %10 {strides = array<i32>} : memref<256x128xf32, #tpu.memory_space<vmem>>, vector<256x128xf32>,
    %c2_i32 = arith.constant 2 : i32
    %12 = arith.cmpi eq, %arg1, %c2_i32 : i32
    %13 = arith.extui %12 : i1 to i32
    %c0_i32_7 = arith.constant 0 : i32
    %14 = arith.cmpi ne, %13, %c0_i32_7 : i32
    scf.if %14 {
      %c0_8 = arith.constant 0 : index
      %c0_9 = arith.constant 0 : index
      %15 = vector.load %arg4[%c0_8, %c0_9] : memref<256x128xf32, #tpu.memory_space<vmem>>, vector<256x128xf32>
      %16 = math.absf %15 : vector<256x128xf32>
      %cst_10 = arith.constant dense<0.000000e+00> : vector<128xf32>
      %17 = vector.multi_reduction <add>, %16, %cst_10 [0] : vector<256x128xf32> to vector<128xf32>
      %18 = vector.shape_cast %17 : vector<128xf32> to vector<1x128xf32>
      %cst_11 = arith.constant 9.99999997E-7 : f32
      %19 = vector.broadcast %cst_11 : f32 to vector<1x128xf32>
      %20 = arith.addf %18, %19 : vector<1x128xf32>
      %21 = math.rsqrt %20 : vector<1x128xf32>
      %c0_12 = arith.constant 0 : index
      %c0_13 = arith.constant 0 : index
      %22 = vector.load %arg3[%c0_12, %c0_13] : memref<1x128xf32, #tpu.memory_space<vmem>>, vector<1x128xf32>
      tpu.vector_store %arg3[%c0_12, %c0_13], %21 {strides = array<i32>} : memref<1x128xf32, #tpu.memory_space<vmem>>, vector<1x128xf32>,
    } else {
    }
    return
  }
  func.func @transform_0(%arg0: i32, %arg1: i32) -> (i32, i32) {
    %c0_i32 = arith.constant 0 : i32
    %c0_i32_0 = arith.constant 0 : i32
    return %arg1, %c0_i32 : i32, i32
  }
  func.func @transform_1(%arg0: i32, %arg1: i32) -> (i32, i32) {
    %c0_i32 = arith.constant 0 : i32
    %c0_i32_0 = arith.constant 0 : i32
    return %c0_i32, %arg0 : i32, i32
  }
}

</mosaic_0001>

<bundles_post_ra>
// kernel: tpu_custom_call.1
= control target key start
LH: loop header
LB: loop body
LE: loop exit
PB: predicated region body
PF: predicated region fallthrough
CT: control target
= control target key end

     0   :  { %6 = vsyncpa [#allocation4], 0  ;;  %s1624_s0 = inlined_call_operand.hbm [shape: f32[384,256], index: 0, kind: input, shape index: {}]   ;;  %s1625_s1 = inlined_call_operand.hbm [shape: f32[1,256], index: 1, kind: output, shape index: {}]  }
   0x1   :  { %8 = vsyncpa [#allocation4 + $0x1], 0 }
   0x2   :  { %9 = vsyncpa [#allocation5], 0 }
   0x3   :  { %11 = vsyncpa [#allocation5 + $0x1], 0  ;;  %s1385_s6 = smov 0   ;;  %s1387_s7 = smov 0  }
   0x4   :  { %s1389_s8 = smov 0   ;;  %s1391_s9 = smov 0  }
   0x5   :  { %s1393_s10 = smov 0   ;;  %s1395_s11 = smov 0  }
   0x6   :  { %s1397_s12 = smov 0   ;;  %s1399_s13 = smov 0  }
   0x7   :  { %s1401_s14 = smov 0   ;;  %s1403_s15 = smov 0  }
   0x8   :  { %s1405_s16 = smov 0  }
   0x9 LB: > { %s822_s17 = sadd.s32 4294967295, %s1368_s16   ;;  %s823_s18 = sadd.s32 4294967294, %s1368_s16   ;;  %s1368_s16 = sphi %s1405_s16, %s17_s16   ;;  %s1364_s15 = sphi %s1403_s15, %s1646_s15   ;;  %s1360_s14 = sphi %s1401_s14, %s1645_s14   ;;  %s1356_s13 = sphi %s1399_s13, %s1644_s13   ;;  %s1352_s12 = sphi %s1397_s12, %s1643_s12   ;;  %s1348_s11 = sphi %s1395_s11, %s1642_s11   ;;  %s1344_s10 = sphi %s1393_s10, %s1641_s10   ;;  %s1340_s9 = sphi %s1391_s9, %s1640_s9   ;;  %s1336_s8 = sphi %s1389_s8, %s1639_s8   ;;  %s1332_s7 = sphi %s1387_s7, %s1638_s7   ;;  %s1328_s6 = sphi %s1385_s6, %s1637_s6  }
   0xa   : > { %s26_s19 = sadd.s32 1, %s1360_s14  ;;  %s29_s20 = sadd.s32 1, %s1364_s15 }
   0xb   : > { %p27_p0 = scmp.ge.s32.totalorder %s26_s19, 3  ;;  %s36_s21 = sadd.s32 1, %s1348_s11 }
   0xc   : > { %p43_p1 = scmp.ne.s32.totalorder %s1348_s11, %s1344_s10  ;;  %p44_p2 = scmp.eq.s32.totalorder %s1368_s16, 0 }
   0xd   : > { %s1648_s19 = smov (%p27_p0, %s26_s19), 0  ;;  %s1650_s20 = smov (!%p27_p0, %s29_s20), %s1364_s15 }
   0xe   : > { %1628 = sst [smem:[#allocation9_spill]] %s1648_s19  ;;  %s33_s22 = ssub.s32 %s1360_s14, %s1648_s19 }
   0xf   : > { %p1451_p3 = por %p44_p2, %p43_p1  ;;  %p31_p4 = scmp.ge.s32.totalorder %s1650_s20, 2 }
  0x10   : > { %p34_p5 = scmp.eq.s32.totalorder %s33_s22, 0  ;;  %p49_p6 = scmp.ne.s32.totalorder %s1344_s10, %s1340_s9 }
  0x11   : > { %p50_p7 = scmp.eq.s32.totalorder %s822_s17, 0  ;;  %s1652_s20 = smov (%p31_p4, %s1650_s20), 0 }
  0x12   : > { %1630 = sst [smem:[#allocation10_spill]] %s1652_s20  ;;  %s59_s26 = ssub.s32 %s1364_s15, %s1652_s20 }
  0x13   : > { %s1459_s24 = scalar_select %p34_p5, %s1348_s11, %s36_s21  }
  0x14   : > { %p1461_p8 = por %p50_p7, %p49_p6  ;;  %p60_p9 = scmp.eq.s32.totalorder %s59_s26, 0 }
  0x15   : > { %s62_s27 = sadd.s32 1, %s1336_s8  ;;  %p72_p10 = scmp.ne.s32.totalorder %s1336_s8, %s1332_s7 }
  0x16   : > { %p73_p11 = scmp.eq.s32.totalorder %s822_s17, 5  ;;  %p78_p13 = scmp.ne.s32.totalorder %s1332_s7, %s1328_s6 }
  0x17   : > { %s1471_s28 = scalar_select %p60_p9, %s1336_s8, %s62_s27  }
  0x18   : > { %p1473_p12 = por %p73_p11, %p72_p10  ;;  %p79_p0 = scmp.eq.s32.totalorder %s823_s18, 5 }
  0x19   : > { %p1013_p1 = scmp.lt.s32.totalorder %s1368_s16, 6  ;;  %s99_s30 = sand.u32 1, %s1348_s11  }
  0x1a   : > { %p1481_p2 = por %p79_p0, %p78_p13  ;;  %s826_s3 = sshll.u32 %s99_s30, 8 }
  0x1b   : > { %s840_s4 = sshll.u32 %s1360_s14, 12  ;;  %s103_s21 = scalar_lea.vmem [#allocation3], %s826_s3 }
  0x1c   : > { %s110_s17 = scalar_lea.hbm %s1624_s0, %s840_s4  ;;  %s111_s22 = sshll.u32 %s103_s21, 4  ;;  %s112_s22 = int_to_ptr.vmem [resolvable:$true] %s111_s22 }
  0x1d   : > { %p1491_p4 = pnand %p1013_p1, %p1451_p3  ;;  %s100_s18 = scalar_lea.sflag [#allocation4], %s99_s30 }
  0x1e   : > { %s1233_s27 = scalar_lea.vmem %s112_s22, 4096  ;;  %s1370_s20 = smov [#allocation3]  }
  0x1f   : > { %p1222_p5 = pneg %p1491_p4  ;;  %p1234_p6 = scmp.ne.s32.totalorder %s112_s22, %s1233_s27 }
  0x20   : > { %s1238_s19 = sshll.u32 %s1370_s20, 4  ;;  %s1239_s19 = int_to_ptr.vmem [resolvable:$false] %s1238_s19 }
  0x21   : > { %p1236_p7 = pnand %p1234_p6, %p1222_p5  ;;  %s1240_s4 = scalar_lea.vmem %s1239_s19, 8192 }
  0x22   : > { %p1241_p10 = scmp.lt.s32.totalorder %s112_s22, %s1239_s19  ;;  %p1242_p11 = scmp.lt.s32.totalorder %s1240_s4, %s1233_s27 }
  0x23   : > { %p1237_p9 = pneg %p1236_p7 }
  0x24   : > { %p1243_p13 = por %p1242_p11, %p1241_p10 }
  0x26   : > { %p1244_p3 = pnand %p1243_p13, %p1237_p9 }
  0x28   : > { %1247 = shalt.err (!%p1244_p3)
}
  0x29   : > { %s1371_s23 = smov 256   ;;  %s1372_s30 = smov 16  }
  0x2a   : > { %1008 = dma.hbm_to_vmem [thread:$0]  (!%p1491_p4), %s110_s17, 4096, %s112_s22, %s100_s18, %s1371_s23, %s1371_s23, %s1372_s30  }
  0x2b   : > { %p830_p0 = scmp.ge.s32.totalorder %s1368_s16, 1  ;;  %p119_p1 = scmp.lt.s32.totalorder %s1368_s16, 7 }
  0x2d   : > { %p120_p5 = pnand %p830_p0, %p119_p1 }
  0x2e   : > { %s125_s20 = sand.u32 (!%p120_p5), 1, %s1344_s10  }
  0x2f   : > { %123 = sbr.rel (%p120_p5) target bundleno = 582 (0x246), region = 24  ;;  %s831_s3 = sshll.u32 (!%p120_p5), %s125_s20, 8 }
  0x30   : > { %s126_s19 = scalar_lea.sflag (!%p120_p5), [#allocation4], %s125_s20  ;;  %s1502_s5 = scalar_lea.vmem (!%p120_p5), [#allocation3], %s831_s3 }
  0x34   : > { %1319 = dma.done.wait (%p1461_p8), %s126_s19, 4096  }
  0x35   : > { %1321 = vsyncadd (%p1461_p8), %s126_s19, 4294963200  ;;  %s145_s9 = sand.u32 1, %s1332_s7   ;;  %p832_p4 = scmp.ne.s32.totalorder %s1352_s12, 0 }
  0x36   : > { %s1511_s17 = scalar_lea.vmem [#allocation6], %s145_s9 }
  0x37   : > { %151 = sbr.rel (%p832_p4) target bundleno = 77 (0x4d), region = 32 }
  0x3c   : > { %v1373_v0 = vmov 0.0  }
  0x3d   : > { %152 = vst [vmem:[#allocation2 + $0xb0] sm:$0xff] %v1373_v0  ;;  %153 = vst [vmem:[#allocation2] sm:$0xff] %v1373_v0 }
  0x3e   : > { %154 = vst [vmem:[#allocation2 + $0xd8] sm:$0xff] %v1373_v0  ;;  %155 = vst [vmem:[#allocation2 + $0x18] sm:$0xff] %v1373_v0 }
  0x3f   : > { %156 = vst [vmem:[#allocation2 + $0x50] sm:$0xff] %v1373_v0  ;;  %157 = vst [vmem:[#allocation2 + $0x68] sm:$0xff] %v1373_v0 }
  0x40   : > { %158 = vst [vmem:[#allocation2 + $0x30] sm:$0xff] %v1373_v0  ;;  %159 = vst [vmem:[#allocation2 + $0x48] sm:$0xff] %v1373_v0 }
  0x41   : > { %160 = vst [vmem:[#allocation2 + $0x80] sm:$0xff] %v1373_v0  ;;  %161 = vst [vmem:[#allocation2 + $0x88] sm:$0xff] %v1373_v0 }
  0x42   : > { %162 = vst [vmem:[#allocation2 + $0xe8] sm:$0xff] %v1373_v0  ;;  %163 = vst [vmem:[#allocation2 + $0xb8] sm:$0xff] %v1373_v0 }
  0x43   : > { %164 = vst [vmem:[#allocation2 + $0x60] sm:$0xff] %v1373_v0  ;;  %165 = vst [vmem:[#allocation2 + $0xf0] sm:$0xff] %v1373_v0 }
  0x44   : > { %166 = vst [vmem:[#allocation2 + $0x8] sm:$0xff] %v1373_v0  ;;  %167 = vst [vmem:[#allocation2 + $0x78] sm:$0xff] %v1373_v0 }
  0x45   : > { %168 = vst [vmem:[#allocation2 + $0x38] sm:$0xff] %v1373_v0  ;;  %169 = vst [vmem:[#allocation2 + $0x58] sm:$0xff] %v1373_v0 }
  0x46   : > { %170 = vst [vmem:[#allocation2 + $0x40] sm:$0xff] %v1373_v0  ;;  %171 = vst [vmem:[#allocation2 + $0xc8] sm:$0xff] %v1373_v0 }
  0x47   : > { %172 = vst [vmem:[#allocation2 + $0xe0] sm:$0xff] %v1373_v0  ;;  %173 = vst [vmem:[#allocation2 + $0x90] sm:$0xff] %v1373_v0 }
  0x48   : > { %174 = vst [vmem:[#allocation2 + $0x70] sm:$0xff] %v1373_v0  ;;  %175 = vst [vmem:[#allocation2 + $0xc0] sm:$0xff] %v1373_v0 }
  0x49   : > { %176 = vst [vmem:[#allocation2 + $0xa8] sm:$0xff] %v1373_v0  ;;  %177 = vst [vmem:[#allocation2 + $0xd0] sm:$0xff] %v1373_v0 }
  0x4a   : > { %178 = vst [vmem:[#allocation2 + $0x10] sm:$0xff] %v1373_v0  ;;  %179 = vst [vmem:[#allocation2 + $0x28] sm:$0xff] %v1373_v0 }
  0x4b   : > { %180 = vst [vmem:[#allocation2 + $0xa0] sm:$0xff] %v1373_v0  ;;  %181 = vst [vmem:[#allocation2 + $0xf8] sm:$0xff] %v1373_v0 }
  0x4c   : > { %182 = vst [vmem:[#allocation2 + $0x20] sm:$0xff] %v1373_v0  ;;  %183 = vst [vmem:[#allocation2 + $0x98] sm:$0xff] %v1373_v0 }
  0x4d PF: > { %v184_v1 = vld [vmem:[%s1502_s5] sm:$0xff]  ;;  %v185_v2 = vld [vmem:[%s1502_s5 + $0x8] sm:$0xff]  ;;  %v186_v3 = vld [vmem:[%s1502_s5 + $0x10] sm:$0xff]  ;;  %s833_s25 = sshll.u32 %s1356_s13, 7  ;;  %p835_p8 = scmp.ne.s32.totalorder %s1352_s12, 2 }
  0x4e   : > { %v1106_v4 = vpack.i.bf16 %v185_v2, %v184_v1  ;;  %v187_v5 = vld [vmem:[%s1502_s5 + $0x18] sm:$0xff]  ;;  %s217_s21 = sshra.s32 %s833_s25, 7  ;;  %v188_v7 = vld [vmem:[%s1502_s5 + $0x20] sm:$0xff]  ;;  %v189_v8 = vld [vmem:[%s1502_s5 + $0x28] sm:$0xff] }
  0x4f   : > { %v1108_v6 = vpack.i.bf16 %v187_v5, %v186_v3  ;;  %s834_s22 = sshll.u32 %s217_s21, 3  ;;  %v1110_v9 = vpack.i.bf16 %v189_v8, %v188_v7  ;;  %v190_v10 = vld [vmem:[%s1502_s5 + $0x30] sm:$0xff]  ;;  %v191_v11 = vld [vmem:[%s1502_s5 + $0x38] sm:$0xff]  ;;  %v192_v15 = vld [vmem:[%s1502_s5 + $0x40] sm:$0xff] }
  0x50   : > { %1107 = vxpose.xlu0.b32.start [1/16] %v1106_v4, 128  ;;  %s1522_s26 = scalar_lea.vmem %s1502_s5, %s834_s22 [#allocation3]  ;;  %v1112_v13 = vpack.i.bf16 %v191_v11, %v190_v10  ;;  %v193_v16 = vld [vmem:[%s1502_s5 + $0x48] sm:$0xff]  ;;  %v194_v20 = vld [vmem:[%s1502_s5 + $0x50] sm:$0xff]  ;;  %v195_v21 = vld [vmem:[%s1502_s5 + $0x58] sm:$0xff] }
  0x51   : > { %v236_v12 = vld [vmem:[%s1522_s26 + $0xf0] sm:$0xff]  ;;  %v235_v14 = vld [vmem:[%s1522_s26 + $0xe0] sm:$0xff]  ;;  %v1114_v18 = vpack.i.bf16 %v193_v16, %v192_v15  ;;  %v1116_v23 = vpack.i.bf16 %v195_v21, %v194_v20  ;;  %v197_v26 = vld [vmem:[%s1502_s5 + $0x68] sm:$0xff] }
  0x52   : > { %889 = vmatprep.subr.mxu0 %v236_v12  ;;  %969 = vmatprep.subr.mxu1 %v236_v12  ;;  %v234_v17 = vld [vmem:[%s1522_s26 + $0xd0] sm:$0xff]  ;;  %v233_v19 = vld [vmem:[%s1522_s26 + $0xc0] sm:$0xff]  ;;  %v199_v30 = vld [vmem:[%s1502_s5 + $0x78] sm:$0xff] }
  0x53   : > { %890 = vmatpush3.msra.mxu0 %v236_v12  ;;  %985 = vmatpush3.msra.mxu1 %v236_v12  ;;  %v232_v22 = vld [vmem:[%s1522_s26 + $0xb0] sm:$0xff]  ;;  %v231_v24 = vld [vmem:[%s1522_s26 + $0xa0] sm:$0xff]  ;;  %v201_v35 = vld [vmem:[%s1502_s5 + $0x88] sm:$0xff] }
  0x54   : > { %1109 = vxpose.xlu0.b32.cont [2/16] %v1108_v6, 128  ;;  %891 = vmatprep.subr.mxu0 %v235_v14  ;;  %v196_v25 = vld [vmem:[%s1502_s5 + $0x60] sm:$0xff]  ;;  %v230_v27 = vld [vmem:[%s1522_s26 + $0x90] sm:$0xff]  ;;  %v203_v40 = vld [vmem:[%s1502_s5 + $0x98] sm:$0xff] }
  0x55   : > { %970 = vmatprep.subr.mxu1 %v235_v14  ;;  %892 = vmatpush3.msra.mxu0 %v235_v14  ;;  %v1118_v28 = vpack.i.bf16 %v197_v26, %v196_v25  ;;  %v198_v29 = vld [vmem:[%s1502_s5 + $0x70] sm:$0xff]  ;;  %v229_v31 = vld [vmem:[%s1522_s26 + $0x80] sm:$0xff]  ;;  %v205_v45 = vld [vmem:[%s1502_s5 + $0xa8] sm:$0xff] }
  0x56   : > { %986 = vmatpush3.msra.mxu1 %v235_v14  ;;  %893 = vmatprep.subr.mxu0 %v234_v17  ;;  %v228_v32 = vld [vmem:[%s1522_s26 + $0x70] sm:$0xff]  ;;  %v1120_v33 = vpack.i.bf16 %v199_v30, %v198_v29  ;;  %v200_v34 = vld [vmem:[%s1502_s5 + $0x80] sm:$0xff]  ;;  %v207_v49 = vld [vmem:[%s1502_s5 + $0xb8] sm:$0xff] }
  0x57   : > { %971 = vmatprep.subr.mxu1 %v234_v17  ;;  %894 = vmatpush3.msra.mxu0 %v234_v17  ;;  %v227_v36 = vld [vmem:[%s1522_s26 + $0x60] sm:$0xff]  ;;  %v1122_v37 = vpack.i.bf16 %v201_v35, %v200_v34  ;;  %v226_v38 = vld [vmem:[%s1522_s26 + $0x50] sm:$0xff]  ;;  %v209_v54 = vld [vmem:[%s1502_s5 + $0xc8] sm:$0xff] }
  0x58   : > { %1111 = vxpose.xlu0.b32.cont [3/16] %v1110_v9, 128  ;;  %987 = vmatpush3.msra.mxu1 %v234_v17  ;;  %v202_v39 = vld [vmem:[%s1502_s5 + $0x90] sm:$0xff]  ;;  %v225_v41 = vld [vmem:[%s1522_s26 + $0x40] sm:$0xff]  ;;  %v211_v57 = vld [vmem:[%s1502_s5 + $0xd8] sm:$0xff] }
  0x59   : > { %895 = vmatprep.subr.mxu0 %v233_v19  ;;  %972 = vmatprep.subr.mxu1 %v233_v19  ;;  %v1124_v42 = vpack.i.bf16 %v203_v40, %v202_v39  ;;  %v224_v43 = vld [vmem:[%s1522_s26 + $0x30] sm:$0xff]  ;;  %v204_v44 = vld [vmem:[%s1502_s5 + $0xa0] sm:$0xff]  ;;  %v213_v60 = vld [vmem:[%s1502_s5 + $0xe8] sm:$0xff] }
  0x5a   : > { %896 = vmatpush3.msra.mxu0 %v233_v19  ;;  %988 = vmatpush3.msra.mxu1 %v233_v19  ;;  %v223_v46 = vld [vmem:[%s1522_s26 + $0x20] sm:$0xff]  ;;  %v1126_v47 = vpack.i.bf16 %v205_v45, %v204_v44  ;;  %v206_v48 = vld [vmem:[%s1502_s5 + $0xb0] sm:$0xff]  ;;  %v215_v63 = vld [vmem:[%s1502_s5 + $0xf8] sm:$0xff] }
  0x5b   : > { %897 = vmatprep.subr.mxu0 %v232_v22  ;;  %973 = vmatprep.subr.mxu1 %v232_v22  ;;  %v222_v50 = vld [vmem:[%s1522_s26 + $0x10] sm:$0xff]  ;;  %v221_v51 = vld [vmem:[%s1522_s26] sm:$0xff]  ;;  %v1128_v52 = vpack.i.bf16 %v207_v49, %v206_v48 }
  0x5c   : > { %1113 = vxpose.xlu0.b32.cont [4/16] %v1112_v13, 128  ;;  %898 = vmatpush3.msra.mxu0 %v232_v22  ;;  %v208_v53 = vld [vmem:[%s1502_s5 + $0xc0] sm:$0xff]  ;;  %v210_v56 = vld [vmem:[%s1502_s5 + $0xd0] sm:$0xff] }
  0x5d   : > { %989 = vmatpush3.msra.mxu1 %v232_v22  ;;  %899 = vmatprep.subr.mxu0 %v231_v24  ;;  %v1130_v55 = vpack.i.bf16 %v209_v54, %v208_v53  ;;  %v1132_v58 = vpack.i.bf16 %v211_v57, %v210_v56  ;;  %v212_v59 = vld [vmem:[%s1502_s5 + $0xe0] sm:$0xff]  ;;  %v214_v62 = vld [vmem:[%s1502_s5 + $0xf0] sm:$0xff]  ;;  %v253_v54 = vld [vmem:[#allocation2 + $0x38] sm:$0xff] }
  0x5e   : > { %974 = vmatprep.subr.mxu1 %v231_v24  ;;  %900 = vmatpush3.msra.mxu0 %v231_v24  ;;  %v1134_v61 = vpack.i.bf16 %v213_v60, %v212_v59  ;;  %v1136_v0 = vpack.i.bf16 %v215_v63, %v214_v62  ;;  %v238_v49 = vld [vmem:[#allocation2] sm:$0xff]  ;;  %v237_v53 = vld [vmem:[#allocation2 + $0xb0] sm:$0xff]  ;;  %v256_v62 = vld [vmem:[#allocation2 + $0xc8] sm:$0xff] }
  0x5f   : > { %990 = vmatpush3.msra.mxu1 %v231_v24  ;;  %901 = vmatprep.subr.mxu0 %v230_v27 }
  0x60   : > { %1115 = vxpose.xlu0.b32.cont [5/16] %v1114_v18, 128  ;;  %975 = vmatprep.subr.mxu1 %v230_v27 }
  0x61   : > { %902 = vmatpush3.msra.mxu0 %v230_v27  ;;  %991 = vmatpush3.msra.mxu1 %v230_v27 }
  0x62   : > { %903 = vmatprep.subr.mxu0 %v229_v31  ;;  %976 = vmatprep.subr.mxu1 %v229_v31 }
  0x63   : > { %904 = vmatpush3.msra.mxu0 %v229_v31  ;;  %992 = vmatpush3.msra.mxu1 %v229_v31 }
  0x64   : > { %1117 = vxpose.xlu0.b32.cont [6/16] %v1116_v23, 128  ;;  %905 = vmatprep.subr.mxu0 %v228_v32 }
  0x65   : > { %977 = vmatprep.subr.mxu1 %v228_v32  ;;  %906 = vmatpush3.msra.mxu0 %v228_v32 }
  0x66   : > { %993 = vmatpush3.msra.mxu1 %v228_v32  ;;  %907 = vmatprep.subr.mxu0 %v227_v36 }
  0x67   : > { %978 = vmatprep.subr.mxu1 %v227_v36  ;;  %908 = vmatpush3.msra.mxu0 %v227_v36 }
  0x68   : > { %1119 = vxpose.xlu0.b32.cont [7/16] %v1118_v28, 128  ;;  %994 = vmatpush3.msra.mxu1 %v227_v36 }
  0x69   : > { %909 = vmatprep.subr.mxu0 %v226_v38  ;;  %979 = vmatprep.subr.mxu1 %v226_v38 }
  0x6a   : > { %910 = vmatpush3.msra.mxu0 %v226_v38  ;;  %995 = vmatpush3.msra.mxu1 %v226_v38 }
  0x6b   : > { %911 = vmatprep.subr.mxu0 %v225_v41  ;;  %980 = vmatprep.subr.mxu1 %v225_v41 }
  0x6c   : > { %1121 = vxpose.xlu0.b32.cont [8/16] %v1120_v33, 128  ;;  %912 = vmatpush3.msra.mxu0 %v225_v41 }
  0x6d   : > { %996 = vmatpush3.msra.mxu1 %v225_v41  ;;  %913 = vmatprep.subr.mxu0 %v224_v43 }
  0x6e   : > { %981 = vmatprep.subr.mxu1 %v224_v43  ;;  %914 = vmatpush3.msra.mxu0 %v224_v43 }
  0x6f   : > { %997 = vmatpush3.msra.mxu1 %v224_v43  ;;  %915 = vmatprep.subr.mxu0 %v223_v46 }
  0x70   : > { %1123 = vxpose.xlu0.b32.cont [9/16] %v1122_v37, 128  ;;  %982 = vmatprep.subr.mxu1 %v223_v46 }
  0x71   : > { %916 = vmatpush3.msra.mxu0 %v223_v46  ;;  %998 = vmatpush3.msra.mxu1 %v223_v46 }
  0x72   : > { %917 = vmatprep.subr.mxu0 %v222_v50  ;;  %983 = vmatprep.subr.mxu1 %v222_v50 }
  0x73   : > { %918 = vmatpush3.msra.mxu0 %v222_v50  ;;  %999 = vmatpush3.msra.mxu1 %v222_v50  ;;  %v254_v50 = vld [vmem:[#allocation2 + $0x58] sm:$0xff] }
  0x74   : > { %1125 = vxpose.xlu0.b32.cont [10/16] %v1124_v42, 128  ;;  %919 = vmatprep.subr.mxu0 %v221_v51 }
  0x75   : > { %984 = vmatprep.subr.mxu1 %v221_v51  ;;  %920 = vmatpush3.msra.mxu0 %v221_v51 }
  0x76   : > { %1000 = vmatpush3.msra.mxu1 %v221_v51 }
  0x78   : > { %1127 = vxpose.xlu0.b32.cont [11/16] %v1126_v47, 128 }
  0x7c   : > { %1129 = vxpose.xlu0.b32.cont [12/16] %v1128_v52, 128 }
  0x80   : > { %1131 = vxpose.xlu0.b32.cont [13/16] %v1130_v55, 128 }
  0x84   : > { %1133 = vxpose.xlu0.b32.cont [14/16] %v1132_v58, 128 }
  0x88   : > { %1135 = vxpose.xlu0.b32.cont [15/16] %v1134_v61, 128  ;;  %v240_v61 = vld [vmem:[#allocation2 + $0x18] sm:$0xff] }
  0x8c   : > { %1137 = vxpose.xlu0.b32.end [16/16] %v1136_v0, 128 }
  0xcc   : > { %v1138_v1 = vpop.trf.xlu0 }
  0xcd   : > { %v1139_v2 = vunpack.i.l.bf16 %v1138_v1  ;;  %v1142_v3 = vunpack.i.h.bf16 %v1138_v1  ;;  %v239_v1 = vld [vmem:[#allocation2 + $0xd8] sm:$0xff] }
  0xcf   : > { %921 = vmatprep.mubr.f32.mxu0 %v1139_v2  ;;  %945 = vmatprep.mubr.f32.mxu1 %v1142_v3  ;;  %v255_v2 = vld [vmem:[#allocation2 + $0x40] sm:$0xff] }
  0xd0   : > { %v1143_v4 = vpop.trf.xlu0 }
  0xd1   : > { %v1144_v5 = vunpack.i.l.bf16 %v1143_v4  ;;  %v1147_v6 = vunpack.i.h.bf16 %v1143_v4 }
  0xd3   : > { %922 = vmatmul.mubr.f32.vlgmr.msra.gmra.mxu0 %v1144_v5  ;;  %946 = vmatmul.mubr.f32.vlgmr.msra.gmra.mxu1 %v1147_v6 }
  0xd4   : > { %v1148_v7 = vpop.trf.xlu0 }
  0xd5   : > { %v1149_v8 = vunpack.i.l.bf16 %v1148_v7  ;;  %v1152_v9 = vunpack.i.h.bf16 %v1148_v7 }
  0xd7   : > { %924 = vmatprep.mubr.f32.mxu0 %v1149_v8  ;;  %948 = vmatprep.mubr.f32.mxu1 %v1152_v9  ;;  %v242_v9 = vld [vmem:[#allocation2 + $0x68] sm:$0xff] }
  0xd8   : > { %v1153_v10 = vpop.trf.xlu0 }
  0xd9   : > { %v1154_v11 = vunpack.i.l.bf16 %v1153_v10  ;;  %v1157_v12 = vunpack.i.h.bf16 %v1153_v10  ;;  %v258_v10 = vld [vmem:[#allocation2 + $0x90] sm:$0xff] }
  0xdb   : > { %925 = vmatmul.mubr.f32.gmra.mxu0 %v1154_v11  ;;  %949 = vmatmul.mubr.f32.gmra.mxu1 %v1157_v12 }
  0xdc   : > { %v1158_v13 = vpop.trf.xlu0 }
  0xdd   : > { %v1159_v14 = vunpack.i.l.bf16 %v1158_v13  ;;  %v1162_v15 = vunpack.i.h.bf16 %v1158_v13  ;;  %v241_v13 = vld [vmem:[#allocation2 + $0x50] sm:$0xff] }
  0xdf   : > { %927 = vmatprep.mubr.f32.mxu0 %v1159_v14  ;;  %951 = vmatprep.mubr.f32.mxu1 %v1162_v15  ;;  %v257_v14 = vld [vmem:[#allocation2 + $0xe0] sm:$0xff] }
  0xe0   : > { %v1163_v16 = vpop.trf.xlu0 }
  0xe1   : > { %v1164_v17 = vunpack.i.l.bf16 %v1163_v16  ;;  %v1167_v18 = vunpack.i.h.bf16 %v1163_v16 }
  0xe3   : > { %928 = vmatmul.mubr.f32.gmra.mxu0 %v1164_v17  ;;  %952 = vmatmul.mubr.f32.gmra.mxu1 %v1167_v18 }
  0xe4   : > { %v1168_v19 = vpop.trf.xlu0 }
  0xe5   : > { %v1169_v20 = vunpack.i.l.bf16 %v1168_v19  ;;  %v1172_v21 = vunpack.i.h.bf16 %v1168_v19 }
  0xe7   : > { %930 = vmatprep.mubr.f32.mxu0 %v1169_v20  ;;  %954 = vmatprep.mubr.f32.mxu1 %v1172_v21  ;;  %v244_v21 = vld [vmem:[#allocation2 + $0x48] sm:$0xff] }
  0xe8   : > { %v1173_v22 = vpop.trf.xlu0 }
  0xe9   : > { %v1174_v23 = vunpack.i.l.bf16 %v1173_v22  ;;  %v1177_v24 = vunpack.i.h.bf16 %v1173_v22  ;;  %v260_v22 = vld [vmem:[#allocation2 + $0xc0] sm:$0xff] }
  0xeb   : > { %931 = vmatmul.mubr.f32.gmra.mxu0 %v1174_v23  ;;  %955 = vmatmul.mubr.f32.gmra.mxu1 %v1177_v24 }
  0xec   : > { %v1178_v25 = vpop.trf.xlu0 }
  0xed   : > { %v1179_v26 = vunpack.i.l.bf16 %v1178_v25  ;;  %v1182_v27 = vunpack.i.h.bf16 %v1178_v25  ;;  %v243_v25 = vld [vmem:[#allocation2 + $0x30] sm:$0xff] }
  0xef   : > { %933 = vmatprep.mubr.f32.mxu0 %v1179_v26  ;;  %957 = vmatprep.mubr.f32.mxu1 %v1182_v27  ;;  %v259_v26 = vld [vmem:[#allocation2 + $0x70] sm:$0xff] }
  0xf0   : > { %v1183_v28 = vpop.trf.xlu0 }
  0xf1   : > { %v1184_v29 = vunpack.i.l.bf16 %v1183_v28  ;;  %v1187_v30 = vunpack.i.h.bf16 %v1183_v28 }
  0xf3   : > { %934 = vmatmul.mubr.f32.gmra.mxu0 %v1184_v29  ;;  %958 = vmatmul.mubr.f32.gmra.mxu1 %v1187_v30 }
  0xf4   : > { %v1188_v31 = vpop.trf.xlu0 }
  0xf5   : > { %v1189_v32 = vunpack.i.l.bf16 %v1188_v31  ;;  %v1192_v33 = vunpack.i.h.bf16 %v1188_v31 }
  0xf7   : > { %936 = vmatprep.mubr.f32.mxu0 %v1189_v32  ;;  %960 = vmatprep.mubr.f32.mxu1 %v1192_v33  ;;  %v246_v33 = vld [vmem:[#allocation2 + $0x88] sm:$0xff] }
  0xf8   : > { %v1193_v34 = vpop.trf.xlu0 }
  0xf9   : > { %v1194_v35 = vunpack.i.l.bf16 %v1193_v34  ;;  %v1197_v36 = vunpack.i.h.bf16 %v1193_v34  ;;  %v262_v34 = vld [vmem:[#allocation2 + $0xd0] sm:$0xff] }
  0xfb   : > { %937 = vmatmul.mubr.f32.gmra.mxu0 %v1194_v35  ;;  %961 = vmatmul.mubr.f32.gmra.mxu1 %v1197_v36 }
  0xfc   : > { %v1198_v37 = vpop.trf.xlu0 }
  0xfd   : > { %v1199_v38 = vunpack.i.l.bf16 %v1198_v37  ;;  %v1202_v39 = vunpack.i.h.bf16 %v1198_v37  ;;  %v245_v37 = vld [vmem:[#allocation2 + $0x80] sm:$0xff] }
  0xff   : > { %939 = vmatprep.mubr.f32.mxu0 %v1199_v38  ;;  %963 = vmatprep.mubr.f32.mxu1 %v1202_v39  ;;  %v261_v38 = vld [vmem:[#allocation2 + $0xa8] sm:$0xff] }
 0x100   : > { %v1203_v40 = vpop.trf.xlu0 }
 0x101   : > { %v1204_v41 = vunpack.i.l.bf16 %v1203_v40  ;;  %v1207_v42 = vunpack.i.h.bf16 %v1203_v40 }
 0x103   : > { %940 = vmatmul.mubr.f32.gmra.mxu0 %v1204_v41  ;;  %964 = vmatmul.mubr.f32.gmra.mxu1 %v1207_v42 }
 0x104   : > { %v1208_v43 = vpop.trf.xlu0 }
 0x105   : > { %v1209_v44 = vunpack.i.l.bf16 %v1208_v43  ;;  %v1212_v45 = vunpack.i.h.bf16 %v1208_v43 }
 0x107   : > { %942 = vmatprep.mubr.f32.mxu0 %v1209_v44  ;;  %966 = vmatprep.mubr.f32.mxu1 %v1212_v45  ;;  %v248_v45 = vld [vmem:[#allocation2 + $0xb8] sm:$0xff] }
 0x108   : > { %v1213_v46 = vpop.trf.xlu0 }
 0x109   : > { %v1217_v47 = vunpack.i.h.bf16 %v1213_v46  ;;  %v1214_v48 = vunpack.i.l.bf16 %v1213_v46  ;;  %v264_v46 = vld [vmem:[#allocation2 + $0x28] sm:$0xff] }
 0x10b   : > { %943 = vmatmul.mubr.f32.gmra.mxu0 %v1214_v48  ;;  %967 = vmatmul.mubr.f32.gmra.mxu1 %v1217_v47 }
 0x193   : > { %v923_v51 = vpop.f32.mrf.mxu0  ;;  %v947_v52 = vpop.f32.mrf.mxu1 }
 0x194   : > { %v559_v55 = vadd.f32 %v923_v51, %v238_v49  ;;  %v575_v56 = vadd.f32 %v947_v52, %v254_v50  ;;  %v247_v49 = vld [vmem:[#allocation2 + $0xe8] sm:$0xff]  ;;  %v263_v50 = vld [vmem:[#allocation2 + $0x10] sm:$0xff] }
 0x195   : > { %v399_v57 = vpop.f32.mrf.mxu0  ;;  %v479_v58 = vpop.f32.mrf.mxu1 }
 0x196   : > { %591 = vst [vmem:[#allocation2] sm:$0xff] %v559_v55  ;;  %607 = vst [vmem:[#allocation2 + $0x58] sm:$0xff] %v575_v56  ;;  %v558_v59 = vadd.f32 %v399_v57, %v237_v53  ;;  %v574_v60 = vadd.f32 %v479_v58, %v253_v54  ;;  %v250_v57 = vld [vmem:[#allocation2 + $0xf0] sm:$0xff]  ;;  %v266_v58 = vld [vmem:[#allocation2 + $0xf8] sm:$0xff] }
 0x198   : > { %590 = vst [vmem:[#allocation2 + $0xb0] sm:$0xff] %v558_v59  ;;  %606 = vst [vmem:[#allocation2 + $0x38] sm:$0xff] %v574_v60 }
 0x19b   : > { %v926_v63 = vpop.f32.mrf.mxu0  ;;  %v950_v0 = vpop.f32.mrf.mxu1 }
 0x19c   : > { %v561_v3 = vadd.f32 %v926_v63, %v240_v61  ;;  %v577_v4 = vadd.f32 %v950_v0, %v256_v62  ;;  %v249_v61 = vld [vmem:[#allocation2 + $0x60] sm:$0xff] }
 0x19d   : > { %v409_v5 = vpop.f32.mrf.mxu0  ;;  %v489_v6 = vpop.f32.mrf.mxu1  ;;  %v265_v62 = vld [vmem:[#allocation2 + $0xa0] sm:$0xff] }
 0x19e   : > { %593 = vst [vmem:[#allocation2 + $0x18] sm:$0xff] %v561_v3  ;;  %609 = vst [vmem:[#allocation2 + $0xc8] sm:$0xff] %v577_v4  ;;  %v560_v7 = vadd.f32 %v409_v5, %v239_v1  ;;  %v576_v8 = vadd.f32 %v489_v6, %v255_v2  ;;  %v252_v5 = vld [vmem:[#allocation2 + $0x78] sm:$0xff] }
 0x19f   : > { %v268_v6 = vld [vmem:[#allocation2 + $0x98] sm:$0xff] }
 0x1a0   : > { %592 = vst [vmem:[#allocation2 + $0xd8] sm:$0xff] %v560_v7  ;;  %608 = vst [vmem:[#allocation2 + $0x40] sm:$0xff] %v576_v8 }
 0x1a3   : > { %v929_v11 = vpop.f32.mrf.mxu0  ;;  %v953_v12 = vpop.f32.mrf.mxu1 }
 0x1a4   : > { %v563_v15 = vadd.f32 %v929_v11, %v242_v9  ;;  %v579_v16 = vadd.f32 %v953_v12, %v258_v10  ;;  %v251_v9 = vld [vmem:[#allocation2 + $0x8] sm:$0xff]  ;;  %v267_v10 = vld [vmem:[#allocation2 + $0x20] sm:$0xff] }
 0x1a5   : > { %v419_v17 = vpop.f32.mrf.mxu0  ;;  %v499_v18 = vpop.f32.mrf.mxu1 }
 0x1a6   : > { %595 = vst [vmem:[#allocation2 + $0x68] sm:$0xff] %v563_v15  ;;  %611 = vst [vmem:[#allocation2 + $0x90] sm:$0xff] %v579_v16  ;;  %v562_v19 = vadd.f32 %v419_v17, %v241_v13  ;;  %v578_v20 = vadd.f32 %v499_v18, %v257_v14 }
 0x1a8   : > { %594 = vst [vmem:[#allocation2 + $0x50] sm:$0xff] %v562_v19  ;;  %610 = vst [vmem:[#allocation2 + $0xe0] sm:$0xff] %v578_v20 }
 0x1ab   : > { %v932_v23 = vpop.f32.mrf.mxu0  ;;  %v956_v24 = vpop.f32.mrf.mxu1 }
 0x1ac   : > { %v565_v27 = vadd.f32 %v932_v23, %v244_v21  ;;  %v581_v28 = vadd.f32 %v956_v24, %v260_v22 }
 0x1ad   : > { %v429_v29 = vpop.f32.mrf.mxu0  ;;  %v509_v30 = vpop.f32.mrf.mxu1 }
 0x1ae   : > { %597 = vst [vmem:[#allocation2 + $0x48] sm:$0xff] %v565_v27  ;;  %613 = vst [vmem:[#allocation2 + $0xc0] sm:$0xff] %v581_v28  ;;  %v564_v31 = vadd.f32 %v429_v29, %v243_v25  ;;  %v580_v32 = vadd.f32 %v509_v30, %v259_v26 }
 0x1b0   : > { %596 = vst [vmem:[#allocation2 + $0x30] sm:$0xff] %v564_v31  ;;  %612 = vst [vmem:[#allocation2 + $0x70] sm:$0xff] %v580_v32 }
 0x1b3   : > { %v935_v35 = vpop.f32.mrf.mxu0  ;;  %v959_v36 = vpop.f32.mrf.mxu1 }
 0x1b4   : > { %v567_v39 = vadd.f32 %v935_v35, %v246_v33  ;;  %v583_v40 = vadd.f32 %v959_v36, %v262_v34 }
 0x1b5   : > { %v439_v41 = vpop.f32.mrf.mxu0  ;;  %v519_v42 = vpop.f32.mrf.mxu1 }
 0x1b6   : > { %599 = vst [vmem:[#allocation2 + $0x88] sm:$0xff] %v567_v39  ;;  %615 = vst [vmem:[#allocation2 + $0xd0] sm:$0xff] %v583_v40  ;;  %v566_v43 = vadd.f32 %v439_v41, %v245_v37  ;;  %v582_v44 = vadd.f32 %v519_v42, %v261_v38 }
 0x1b8   : > { %598 = vst [vmem:[#allocation2 + $0x80] sm:$0xff] %v566_v43  ;;  %614 = vst [vmem:[#allocation2 + $0xa8] sm:$0xff] %v582_v44 }
 0x1bb   : > { %v938_v47 = vpop.f32.mrf.mxu0  ;;  %v962_v48 = vpop.f32.mrf.mxu1 }
 0x1bc   : > { %v569_v51 = vadd.f32 %v938_v47, %v248_v45  ;;  %v585_v52 = vadd.f32 %v962_v48, %v264_v46 }
 0x1bd   : > { %v449_v53 = vpop.f32.mrf.mxu0  ;;  %v529_v54 = vpop.f32.mrf.mxu1 }
 0x1be   : > { %601 = vst [vmem:[#allocation2 + $0xb8] sm:$0xff] %v569_v51  ;;  %617 = vst [vmem:[#allocation2 + $0x28] sm:$0xff] %v585_v52  ;;  %v568_v55 = vadd.f32 %v449_v53, %v247_v49  ;;  %v584_v56 = vadd.f32 %v529_v54, %v263_v50 }
 0x1c0   : > { %600 = vst [vmem:[#allocation2 + $0xe8] sm:$0xff] %v568_v55  ;;  %616 = vst [vmem:[#allocation2 + $0x10] sm:$0xff] %v584_v56 }
 0x1c3   : > { %v941_v59 = vpop.f32.mrf.mxu0  ;;  %v965_v60 = vpop.f32.mrf.mxu1 }
 0x1c4   : > { %v571_v63 = vadd.f32 %v941_v59, %v250_v57  ;;  %v587_v0 = vadd.f32 %v965_v60, %v266_v58 }
 0x1c5   : > { %v459_v1 = vpop.f32.mrf.mxu0  ;;  %v539_v2 = vpop.f32.mrf.mxu1 }
 0x1c6   : > { %603 = vst [vmem:[#allocation2 + $0xf0] sm:$0xff] %v571_v63  ;;  %619 = vst [vmem:[#allocation2 + $0xf8] sm:$0xff] %v587_v0  ;;  %v570_v3 = vadd.f32 %v459_v1, %v249_v61  ;;  %v586_v4 = vadd.f32 %v539_v2, %v265_v62 }
 0x1c8   : > { %602 = vst [vmem:[#allocation2 + $0x60] sm:$0xff] %v570_v3  ;;  %618 = vst [vmem:[#allocation2 + $0xa0] sm:$0xff] %v586_v4 }
 0x1cb   : > { %v944_v7 = vpop.f32.mrf.mxu0  ;;  %v968_v8 = vpop.f32.mrf.mxu1 }
 0x1cc   : > { %v573_v11 = vadd.f32 %v944_v7, %v252_v5  ;;  %v589_v12 = vadd.f32 %v968_v8, %v268_v6  ;;  %625 = sbr.rel (%p835_p8) target bundleno = 559 (0x22f), region = 36 }
 0x1cd   : > { %v469_v13 = vpop.f32.mrf.mxu0  ;;  %v549_v14 = vpop.f32.mrf.mxu1 }
 0x1ce   : > { %605 = vst [vmem:[#allocation2 + $0x78] sm:$0xff] %v573_v11  ;;  %621 = vst [vmem:[#allocation2 + $0x98] sm:$0xff] %v589_v12  ;;  %v572_v15 = vadd.f32 %v469_v13, %v251_v9  ;;  %v588_v16 = vadd.f32 %v549_v14, %v267_v10 }
 0x1d0   : > { %604 = vst [vmem:[#allocation2 + $0x8] sm:$0xff] %v572_v15  ;;  %620 = vst [vmem:[#allocation2 + $0x20] sm:$0xff] %v588_v16 }
 0x1d1   : > { %v626_v17 = vld [vmem:[#allocation2 + $0xb0] sm:$0xff]  ;;  %v627_v18 = vld [vmem:[#allocation2] sm:$0xff]  ;;  %v628_v19 = vld [vmem:[#allocation2 + $0xd8] sm:$0xff] }
 0x1d2   : > { %v629_v20 = vld [vmem:[#allocation2 + $0x18] sm:$0xff]  ;;  %v658_v21 = vand.u32 2147483647, %v626_v17  ;;  %v659_v22 = vand.u32 2147483647, %v627_v18  ;;  %v630_v23 = vld [vmem:[#allocation2 + $0x50] sm:$0xff] }
 0x1d3   : > { %v660_v24 = vand.u32 2147483647, %v628_v19  ;;  %v661_v25 = vand.u32 2147483647, %v629_v20  ;;  %v631_v27 = vld [vmem:[#allocation2 + $0x68] sm:$0xff]  ;;  %v632_v30 = vld [vmem:[#allocation2 + $0x30] sm:$0xff] }
 0x1d4   : > { %v690_v26 = vadd.f32 %v659_v22, %v658_v21  ;;  %v662_v28 = vand.u32 2147483647, %v630_v23  ;;  %v663_v31 = vand.u32 2147483647, %v631_v27  ;;  %v633_v33 = vld [vmem:[#allocation2 + $0x48] sm:$0xff]  ;;  %v634_v36 = vld [vmem:[#allocation2 + $0x80] sm:$0xff] }
 0x1d5   : > { %v664_v34 = vand.u32 2147483647, %v632_v30  ;;  %v665_v37 = vand.u32 2147483647, %v633_v33  ;;  %v635_v39 = vld [vmem:[#allocation2 + $0x88] sm:$0xff]  ;;  %v637_v45 = vld [vmem:[#allocation2 + $0xb8] sm:$0xff] }
 0x1d6   : > { %v691_v29 = vadd.f32 %v690_v26, %v660_v24  ;;  %v666_v40 = vand.u32 2147483647, %v634_v36  ;;  %v636_v42 = vld [vmem:[#allocation2 + $0xe8] sm:$0xff]  ;;  %v667_v43 = vand.u32 2147483647, %v635_v39  ;;  %v638_v48 = vld [vmem:[#allocation2 + $0x60] sm:$0xff] }
 0x1d7   : > { %v668_v46 = vand.u32 2147483647, %v636_v42  ;;  %v669_v49 = vand.u32 2147483647, %v637_v45  ;;  %v639_v51 = vld [vmem:[#allocation2 + $0xf0] sm:$0xff]  ;;  %v640_v54 = vld [vmem:[#allocation2 + $0x8] sm:$0xff] }
 0x1d8   : > { %v692_v32 = vadd.f32 %v691_v29, %v661_v25  ;;  %v670_v52 = vand.u32 2147483647, %v638_v48  ;;  %v671_v55 = vand.u32 2147483647, %v639_v51  ;;  %v641_v57 = vld [vmem:[#allocation2 + $0x78] sm:$0xff]  ;;  %v644_v2 = vld [vmem:[#allocation2 + $0x40] sm:$0xff] }
 0x1d9   : > { %v672_v58 = vand.u32 2147483647, %v640_v54  ;;  %v642_v60 = vld [vmem:[#allocation2 + $0x38] sm:$0xff]  ;;  %v673_v61 = vand.u32 2147483647, %v641_v57  ;;  %v645_v5 = vld [vmem:[#allocation2 + $0xc8] sm:$0xff] }
 0x1da   : > { %v693_v35 = vadd.f32 %v692_v32, %v662_v28  ;;  %v643_v63 = vld [vmem:[#allocation2 + $0x58] sm:$0xff]  ;;  %v674_v0 = vand.u32 2147483647, %v642_v60  ;;  %v676_v6 = vand.u32 2147483647, %v644_v2  ;;  %v646_v8 = vld [vmem:[#allocation2 + $0xe0] sm:$0xff] }
 0x1db   : > { %v675_v3 = vand.u32 2147483647, %v643_v63  ;;  %v677_v9 = vand.u32 2147483647, %v645_v5  ;;  %v647_v11 = vld [vmem:[#allocation2 + $0x90] sm:$0xff]  ;;  %v649_v17 = vld [vmem:[#allocation2 + $0xc0] sm:$0xff] }
 0x1dc   : > { %v694_v38 = vadd.f32 %v693_v35, %v663_v31  ;;  %v678_v12 = vand.u32 2147483647, %v646_v8  ;;  %v648_v14 = vld [vmem:[#allocation2 + $0x70] sm:$0xff]  ;;  %v679_v15 = vand.u32 2147483647, %v647_v11  ;;  %v650_v20 = vld [vmem:[#allocation2 + $0xa8] sm:$0xff] }
 0x1dd   : > { %v680_v18 = vand.u32 2147483647, %v648_v14  ;;  %v681_v21 = vand.u32 2147483647, %v649_v17  ;;  %v651_v23 = vld [vmem:[#allocation2 + $0xd0] sm:$0xff]  ;;  %v653_v29 = vld [vmem:[#allocation2 + $0x28] sm:$0xff] }
 0x1de   : > { %v695_v41 = vadd.f32 %v694_v38, %v664_v34  ;;  %v682_v24 = vand.u32 2147483647, %v650_v20  ;;  %v652_v26 = vld [vmem:[#allocation2 + $0x10] sm:$0xff]  ;;  %v683_v27 = vand.u32 2147483647, %v651_v23  ;;  %v654_v32 = vld [vmem:[#allocation2 + $0xa0] sm:$0xff] }
 0x1df   : > { %v684_v30 = vand.u32 2147483647, %v652_v26  ;;  %v685_v33 = vand.u32 2147483647, %v653_v29  ;;  %v655_v35 = vld [vmem:[#allocation2 + $0xf8] sm:$0xff]  ;;  %v656_v38 = vld [vmem:[#allocation2 + $0x20] sm:$0xff] }
 0x1e0   : > { %v696_v44 = vadd.f32 %v695_v41, %v665_v37  ;;  %v686_v36 = vand.u32 2147483647, %v654_v32  ;;  %v687_v39 = vand.u32 2147483647, %v655_v35  ;;  %v657_v41 = vld [vmem:[#allocation2 + $0x98] sm:$0xff] }
 0x1e1   : > { %v688_v42 = vand.u32 2147483647, %v656_v38 }
 0x1e2   : > { %v697_v47 = vadd.f32 %v696_v44, %v666_v40  ;;  %v689_v44 = vand.u32 2147483647, %v657_v41 }
 0x1e4   : > { %v698_v50 = vadd.f32 %v697_v47, %v667_v43 }
 0x1e6   : > { %v699_v53 = vadd.f32 %v698_v50, %v668_v46 }
 0x1e8   : > { %v700_v56 = vadd.f32 %v699_v53, %v669_v49 }
 0x1ea   : > { %v701_v59 = vadd.f32 %v700_v56, %v670_v52 }
 0x1ec   : > { %v702_v62 = vadd.f32 %v701_v59, %v671_v55 }
 0x1ee   : > { %v703_v1 = vadd.f32 %v702_v62, %v672_v58 }
 0x1f0   : > { %v704_v4 = vadd.f32 %v703_v1, %v673_v61 }
 0x1f2   : > { %v705_v7 = vadd.f32 %v704_v4, %v674_v0 }
 0x1f4   : > { %v706_v10 = vadd.f32 %v705_v7, %v675_v3 }
 0x1f6   : > { %v707_v13 = vadd.f32 %v706_v10, %v676_v6 }
 0x1f8   : > { %v708_v16 = vadd.f32 %v707_v13, %v677_v9 }
 0x1fa   : > { %v709_v19 = vadd.f32 %v708_v16, %v678_v12 }
 0x1fc   : > { %v710_v22 = vadd.f32 %v709_v19, %v679_v15 }
 0x1fe   : > { %v711_v25 = vadd.f32 %v710_v22, %v680_v18 }
 0x200   : > { %v712_v28 = vadd.f32 %v711_v25, %v681_v21 }
 0x202   : > { %v713_v31 = vadd.f32 %v712_v28, %v682_v24 }
 0x204   : > { %v714_v34 = vadd.f32 %v713_v31, %v683_v27 }
 0x206   : > { %v715_v37 = vadd.f32 %v714_v34, %v684_v30 }
 0x208   : > { %v716_v40 = vadd.f32 %v715_v37, %v685_v33 }
 0x20a   : > { %v717_v43 = vadd.f32 %v716_v40, %v686_v36 }
 0x20c   : > { %v718_v45 = vadd.f32 %v717_v43, %v687_v39 }
 0x20e   : > { %v719_v46 = vadd.f32 %v718_v45, %v688_v42 }
 0x210   : > { %v720_v47 = vadd.f32 %v719_v46, %v689_v44 }
 0x212   : > { %v721_v48 = vrot.slane %v720_v47, 4 }
 0x214   : > { %v722_v49 = vadd.f32 %v721_v48, %v720_v47 }
 0x216   : > { %v723_v50 = vrot.slane %v722_v49, 2 }
 0x218   : > { %v724_v51 = vadd.f32 %v723_v50, %v722_v49 }
 0x21a   : > { %v725_v52 = vrot.slane %v724_v51, 1 }
 0x21c   : > { %v726_v53 = vadd.f32 %v725_v52, %v724_v51 }
 0x21e   : > { %v727_v54 = vadd.f32 1e-06, %v726_v53 }
 0x220   : > { %1218 = vrsqrt.f32 %v727_v54 }
 0x22d   : > { %v1219_v55 = vpop.eup %1218 }
 0x22e   : > { %729 = vst [vmem:[%s1511_s17] sm:$0x1] %v1219_v55 }
 0x22f PF: > { %s836_s12 = sshll.u32 %s1356_s13, 4  ;;  %s743_s23 = sshll.u32 %s1511_s17, 4  ;;  %s744_s23 = int_to_ptr.vmem [resolvable:$true] %s743_s23 }
 0x230   : > { %s741_s4 = scalar_lea.hbm %s1625_s1, %s836_s12  ;;  %s731_s30 = scalar_lea.sflag [#allocation5], %s145_s9 }
 0x231   : > { %s1248_s20 = scalar_lea.vmem %s744_s23, 16  ;;  %s1374_s3 = smov [#allocation6]  }
 0x232   : > { %p1249_p6 = scmp.ne.s32.totalorder %s744_s23, %s1248_s20  ;;  %s1252_s19 = sshll.u32 %s1374_s3, 4  ;;  %s1253_s19 = int_to_ptr.vmem [resolvable:$false] %s1252_s19 }
 0x233   : > { %s1254_s5 = scalar_lea.vmem %s1253_s19, 32  ;;  %p1255_p10 = scmp.lt.s32.totalorder %s744_s23, %s1253_s19 }
 0x234   : > { %p1250_p7 = pnand %p1249_p6, %p1473_p12  ;;  %p1256_p11 = scmp.lt.s32.totalorder %s1254_s5, %s1248_s20 }
 0x236   : > { %p1251_p9 = pneg %p1250_p7  ;;  %p1257_p13 = por %p1256_p11, %p1255_p10 }
 0x238   : > { %p1258_p3 = pnand %p1257_p13, %p1251_p9 }
 0x23a   : > { %1261 = shalt.err (!%p1258_p3)
}
 0x23b   : > { %s1262_s13 = scalar_lea.hbm %s741_s4, 16  ;;  %s1266_s25 = scalar_lea.hbm %s1625_s1, 32 }
 0x23c   : > { %p1263_p0 = scmp.ne.s32.totalorder %s741_s4, %s1262_s13  ;;  %p1267_p4 = scmp.lt.s32.totalorder %s741_s4, %s1625_s1 }
 0x23d   : > { %p1268_p8 = scmp.lt.s32.totalorder %s1266_s25, %s1262_s13 }
 0x23e   : > { %p1264_p1 = pnand %p1263_p0, %p1473_p12 }
 0x23f   : > { %p1269_p6 = por %p1268_p8, %p1267_p4 }
 0x240   : > { %p1265_p5 = pneg %p1264_p1 }
 0x242   : > { %p1270_p7 = pnand %p1269_p6, %p1265_p5 }
 0x244   : > { %1273 = shalt.err (!%p1270_p7)
}
 0x245   : > { %1003 = dma.vmem_to_hbm [thread:$0]  (%p1473_p12), %s744_s23, 16, %s741_s4, %s731_s30  }
 0x246 PF: > { %p1014_p9 = scmp.ge.s32.totalorder %s1368_s16, 2  ;;  %s755_s26 = sand.u32 1, %s1328_s6  }
 0x247   : > { %s756_s12 = scalar_lea.sflag [#allocation5], %s755_s26 }
 0x248   : > { %p1010_p10 = pnand %p1014_p9, %p1481_p2 }
 0x24a   : > { %p1011_p11 = pneg %p1010_p10 }
 0x24c   : > { %1323 = dma.done.wait (%p1011_p11), %s756_s12, 16  }
 0x24d   : > { %1325 = vsyncadd (%p1011_p11), %s756_s12, 4294967280  ;;  %s17_s16 = sadd.s32 1, %s1368_s16   ;;  %s1635_s29 = sld [smem:[#allocation9_spill]] }
 0x24e   : > { %p14_p13 = scmp.ge.s32.totalorder %s17_s16, 8   ;;  %s1636_s18 = sld [smem:[#allocation10_spill]] }
 0x24f   : > { %s1637_s6 = smov %s1332_s7  ;;  %s1638_s7 = smov %s1336_s8 }
 0x250   : > { %s1639_s8 = smov %s1471_s28  ;;  %s1640_s9 = smov %s1344_s10 }
 0x251   : > { %s1641_s10 = smov %s1348_s11  ;;  %s1642_s11 = smov %s1459_s24 }
 0x252   : > { %s1643_s12 = smov %s1360_s14  ;;  %s1644_s13 = smov %s1364_s15 }
 0x253   : > { %s1645_s14 = smov %s1635_s29  ;;  %16 = sbr.rel (!%p14_p13) target bundleno = 9 (0x9), region = 78 }
 0x254   : > { %s1646_s15 = smov %s1636_s18 }
 0x258   :  { %760 = vsyncpa [#allocation4], 1 }
 0x259   :  { %762 = vsyncpa [#allocation4 + $0x1], 1 }
 0x25a   :  { %763 = vsyncpa [#allocation5], 1 }
 0x25b   :  { %765 = vsyncpa [#allocation5 + $0x1], 1 }

</bundles_post_ra>
